<compile_context>
chip_gen: v5e
topology: v5e:2x2
jax: 0.10.0
libtpu: 0.0.40
codegen_flags: <defaults>
</compile_context>

<pallas_src>
import jax
import jax.numpy as jnp
from jax.experimental import pallas as pl
from jax.experimental.pallas import tpu as pltpu


# ----------------------------- small synthetic config -----------------------------
B = 2        # batch
S = 8        # sequence length
D = 128      # hidden_size        (multiple of 128 -> lane-dense loads/stores)
I = 512      # intermediate_size  (multiple of 128)


def clipseg_mlp_kernel(x_ref, w1_ref, b1_ref, w2_ref, b2_ref, o_ref):
    # x_ref: (tm, D) bf16   w1_ref: (D, I) bf16   b1_ref: (1, I) f32
    # w2_ref: (I, D) bf16   b2_ref: (1, D) f32    o_ref: (tm, D) f32
    x = x_ref[...]
    # fc1: bf16 MXU matmul, f32 accumulate; bias add in f32.
    h = jnp.dot(x, w1_ref[...], preferred_element_type=jnp.float32) + b1_ref[...]
    # quick_gelu (CLIPSeg hidden_act) in f32; sigmoid goes to the EUP slot.
    h = h * jax.nn.sigmoid(1.702 * h)
    # Cast to bf16 only right before the second MXU matmul.
    h = h.astype(jnp.bfloat16)
    o_ref[...] = (
        jnp.dot(h, w2_ref[...], preferred_element_type=jnp.float32) + b2_ref[...]
    ).astype(o_ref.dtype)


def _pick_row_tile(n):
    # Largest row tile (multiple of 8, production target 256-512) dividing n.
    for tm in (512, 256, 128, 64, 32, 16, 8):
        if n % tm == 0:
            return tm
    return n  # tiny/odd N: single full-extent block


def clipseg_mlp(hidden_states, w1, b1, w2, b2):
    """hidden_states: (B, S, D) f32.
    w1: (D, I), b1: (1, I), w2: (I, D), b2: (1, D)  (weights pre-transposed)."""
    Bx, Sx, Dx = hidden_states.shape
    Ix = w1.shape[1]
    N = Bx * Sx
    tm = _pick_row_tile(N)

    # Flatten batch*seq into rows; feed the MXU bf16 (halves activation DMA too).
    x2d = hidden_states.reshape(N, Dx).astype(jnp.bfloat16)
    w1b = w1.astype(jnp.bfloat16)
    w2b = w2.astype(jnp.bfloat16)
    b1f = b1.astype(jnp.float32)
    b2f = b2.astype(jnp.float32)

    cost = pl.CostEstimate(
        flops=2 * N * (Dx * Ix + Ix * Dx),
        transcendentals=N * Ix,
        bytes_accessed=(x2d.size * 2 + w1b.size * 2 + w2b.size * 2
                        + b1f.size * 4 + b2f.size * 4 + N * Dx * 4),
    )

    out2d = pl.pallas_call(
        clipseg_mlp_kernel,
        out_shape=jax.ShapeDtypeStruct((N, Dx), hidden_states.dtype),
        grid_spec=pltpu.PrefetchScalarGridSpec(
            num_scalar_prefetch=0,
            grid=(N // tm,),
            in_specs=[
                pl.BlockSpec((tm, Dx), lambda i: (i, 0)),   # x rows: tiled
                pl.BlockSpec((Dx, Ix), lambda i: (0, 0)),   # w1: VMEM-resident
                pl.BlockSpec((1, Ix), lambda i: (0, 0)),    # b1: resident
                pl.BlockSpec((Ix, Dx), lambda i: (0, 0)),   # w2: resident
                pl.BlockSpec((1, Dx), lambda i: (0, 0)),    # b2: resident
            ],
            out_specs=pl.BlockSpec((tm, Dx), lambda i: (i, 0)),
        ),
        compiler_params=pltpu.CompilerParams(
            dimension_semantics=("parallel",),        # v7x: shard rows across 2 TCs
            vmem_limit_bytes=32 * 1024 * 1024,        # fits v7x's 64 MiB physical VMEM
        ),
        cost_estimate=cost,
    )(x2d, w1b, b1f, w2b, b2f)

    return out2d.reshape(Bx, Sx, Dx)


# ----------------------------- pure-JAX reference -----------------------------
def reference(x, w1, b1, w2, b2):
    h = x @ w1 + b1
    h = h * jax.nn.sigmoid(1.702 * h)
    return h @ w2 + b2


if __name__ == "__main__":
    key = jax.random.PRNGKey(0)
    ks = jax.random.split(key, 8)

    x = jax.random.normal(ks[0], (B, S, D), jnp.float32)

    def lin(kw, kb, fin, fout, scale=0.05):
        w = scale * jax.random.normal(kw, (fin, fout), jnp.float32)
        b = scale * jax.random.normal(kb, (1, fout), jnp.float32)
        return w, b

    w1, b1 = lin(ks[1], ks[2], D, I)   # fc1: hidden -> intermediate
    w2, b2 = lin(ks[3], ks[4], I, D)   # fc2: intermediate -> hidden

    out = clipseg_mlp(x, w1, b1, w2, b2)
    out = jax.block_until_ready(out)

    ref = reference(x, w1, b1, w2, b2)
    assert out.shape == (B, S, D)
    # bf16 MXU operands -> expect ~1e-2-level deviation from the f32 reference.
    assert jnp.allclose(out, ref, atol=3e-2, rtol=3e-2), (
        float(jnp.max(jnp.abs(out - ref))))

    print("KERNEL_OK")
</pallas_src>

<mosaic_0001>
module attributes {stable_mosaic.version = 11 : i64} {
  func.func @clipseg_mlp_kernel(%arg0: i32, %arg1: memref<16x128xbf16, #tpu.memory_space<vmem>>, %arg2: memref<128x512xbf16, #tpu.memory_space<vmem>>, %arg3: memref<1x512xf32, #tpu.memory_space<vmem>>, %arg4: memref<512x128xbf16, #tpu.memory_space<vmem>>, %arg5: memref<1x128xf32, #tpu.memory_space<vmem>>, %arg6: memref<16x128xf32, #tpu.memory_space<vmem>>) attributes {dimension_semantics = [#tpu.dimension_semantics<parallel>], iteration_bounds = array<i64: 1>, scalar_prefetch = 0 : i64, scratch_operands = 0 : i64, tpu.core_type = #tpu.core_type<tc>, window_params = [{transform_indices = @transform_0, window_bounds = array<i64: 16, 128>}, {pipeline_mode = #tpu.pipeline_mode<synchronous>, transform_indices = @transform_1, window_bounds = array<i64: 128, 512>}, {pipeline_mode = #tpu.pipeline_mode<synchronous>, transform_indices = @transform_2, window_bounds = array<i64: 1, 512>}, {pipeline_mode = #tpu.pipeline_mode<synchronous>, transform_indices = @transform_3, window_bounds = array<i64: 512, 128>}, {pipeline_mode = #tpu.pipeline_mode<synchronous>, transform_indices = @transform_4, window_bounds = array<i64: 1, 128>}, {transform_indices = @transform_5, window_bounds = array<i64: 16, 128>}]} {
    %c0 = arith.constant 0 : index
    %c0_0 = arith.constant 0 : index
    %0 = vector.load %arg1[%c0, %c0_0] : memref<16x128xbf16, #tpu.memory_space<vmem>>, vector<16x128xbf16>
    %c0_1 = arith.constant 0 : index
    %c0_2 = arith.constant 0 : index
    %1 = vector.load %arg2[%c0_1, %c0_2] : memref<128x512xbf16, #tpu.memory_space<vmem>>, vector<128x512xbf16>
    %cst = arith.constant dense<0.000000e+00> : vector<16x512xf32>
    %2 = tpu.matmul %0, %1, %cst {dimension_numbers = #tpu.dot_dimension_numbers<[1], [0], [0], [1], [0, 0, 1, 1], [], []>} : vector<16x128xbf16>, vector<128x512xbf16>, vector<16x512xf32> -> vector<16x512xf32>
    %c0_3 = arith.constant 0 : index
    %c0_4 = arith.constant 0 : index
    %3 = vector.load %arg3[%c0_3, %c0_4] : memref<1x512xf32, #tpu.memory_space<vmem>>, vector<1x512xf32>
    %4 = vector.broadcast %3 : vector<1x512xf32> to vector<16x512xf32>
    %5 = arith.addf %2, %4 : vector<16x512xf32>
    %cst_5 = arith.constant 1.702000e+00 : f32
    %6 = vector.broadcast %cst_5 : f32 to vector<16x512xf32>
    %7 = arith.mulf %6, %5 : vector<16x512xf32>
    %8 = arith.negf %7 : vector<16x512xf32>
    %9 = math.exp %8 : vector<16x512xf32>
    %cst_6 = arith.constant 1.000000e+00 : f32
    %10 = vector.broadcast %cst_6 : f32 to vector<16x512xf32>
    %11 = arith.addf %10, %9 : vector<16x512xf32>
    %12 = arith.divf %10, %11 : vector<16x512xf32>
    %13 = arith.mulf %5, %12 : vector<16x512xf32>
    %14 = arith.truncf %13 : vector<16x512xf32> to vector<16x512xbf16>
    %c0_7 = arith.constant 0 : index
    %c0_8 = arith.constant 0 : index
    %15 = vector.load %arg4[%c0_7, %c0_8] : memref<512x128xbf16, #tpu.memory_space<vmem>>, vector<512x128xbf16>
    %cst_9 = arith.constant dense<0.000000e+00> : vector<16x128xf32>
    %16 = tpu.matmul %14, %15, %cst_9 {dimension_numbers = #tpu.dot_dimension_numbers<[1], [0], [0], [1], [0, 0, 1, 1], [], []>} : vector<16x512xbf16>, vector<512x128xbf16>, vector<16x128xf32> -> vector<16x128xf32>
    %c0_10 = arith.constant 0 : index
    %c0_11 = arith.constant 0 : index
    %17 = vector.load %arg5[%c0_10, %c0_11] : memref<1x128xf32, #tpu.memory_space<vmem>>, vector<1x128xf32>
    %18 = vector.broadcast %17 : vector<1x128xf32> to vector<16x128xf32>
    %19 = arith.addf %16, %18 : vector<16x128xf32>
    %c0_12 = arith.constant 0 : index
    %c0_13 = arith.constant 0 : index
    %20 = vector.load %arg6[%c0_12, %c0_13] : memref<16x128xf32, #tpu.memory_space<vmem>>, vector<16x128xf32>
    tpu.vector_store %arg6[%c0_12, %c0_13], %19 {strides = array<i32>} : memref<16x128xf32, #tpu.memory_space<vmem>>, vector<16x128xf32>,
    return
  }
  func.func @transform_0(%arg0: i32) -> (i32, i32) {
    %c0_i32 = arith.constant 0 : i32
    %c0_i32_0 = arith.constant 0 : i32
    return %arg0, %c0_i32 : i32, i32
  }
  func.func @transform_1(%arg0: i32) -> (i32, i32) {
    %c0_i32 = arith.constant 0 : i32
    %c0_i32_0 = arith.constant 0 : i32
    %c0_i32_1 = arith.constant 0 : i32
    return %c0_i32, %c0_i32_0 : i32, i32
  }
  func.func @transform_2(%arg0: i32) -> (i32, i32) {
    %c0_i32 = arith.constant 0 : i32
    %c0_i32_0 = arith.constant 0 : i32
    %c0_i32_1 = arith.constant 0 : i32
    return %c0_i32, %c0_i32_0 : i32, i32
  }
  func.func @transform_3(%arg0: i32) -> (i32, i32) {
    %c0_i32 = arith.constant 0 : i32
    %c0_i32_0 = arith.constant 0 : i32
    %c0_i32_1 = arith.constant 0 : i32
    return %c0_i32, %c0_i32_0 : i32, i32
  }
  func.func @transform_4(%arg0: i32) -> (i32, i32) {
    %c0_i32 = arith.constant 0 : i32
    %c0_i32_0 = arith.constant 0 : i32
    %c0_i32_1 = arith.constant 0 : i32
    return %c0_i32, %c0_i32_0 : i32, i32
  }
  func.func @transform_5(%arg0: i32) -> (i32, i32) {
    %c0_i32 = arith.constant 0 : i32
    %c0_i32_0 = arith.constant 0 : i32
    return %arg0, %c0_i32 : i32, i32
  }
}

</mosaic_0001>

<bundles_post_ra>
// kernel: tpu_custom_call.1
= control target key start
LH: loop header
LB: loop body
LE: loop exit
PB: predicated region body
PF: predicated region fallthrough
CT: control target
= control target key end

     0   :  { %10 = vsyncpa [#allocation3], 0  ;;  %s1599_s0 = inlined_call_operand.hbm [shape: bf16[16,128], index: 0, kind: input, shape index: {}]   ;;  %s1600_s1 = inlined_call_operand.hbm [shape: bf16[128,512], index: 1, kind: input, shape index: {}]   ;;  %s1601_s2 = inlined_call_operand.hbm [shape: f32[1,512], index: 2, kind: input, shape index: {}]   ;;  %s1602_s3 = inlined_call_operand.hbm [shape: bf16[512,128], index: 3, kind: input, shape index: {}]   ;;  %s1603_s4 = inlined_call_operand.vmem [shape: f32[1,128], index: 4, kind: input, shape index: {}]   ;;  %s1604_s5 = inlined_call_operand.hbm [shape: f32[16,128], index: 5, kind: output, shape index: {}]  }
   0x1   :  { %11 = vsyncpa [#allocation6], 0 }
   0x2   :  { %12 = vsyncpa [#allocation9], 0  ;;  %s31_s20 = sshll.u32 %s1600_s1, 4  ;;  %s32_s20 = int_to_ptr.hbm [resolvable:$true] %s31_s20 }
   0x3   :  { %13 = vsyncpa [#allocation4], 0  ;;  %s1364_s21 = smov [#allocation5]   ;;  %s18_s25 = sshll.u32 %s1599_s0, 4  ;;  %s19_s25 = int_to_ptr.hbm [resolvable:$true] %s18_s25 }
   0x4   :  { %s33_s22 = sshll.u32 %s1364_s21, 4  ;;  %s1365_s26 = smov 256   ;;  %s34_s22 = int_to_ptr.vmem [resolvable:$true] %s33_s22 }
   0x5   :  { %s1366_s27 = smov 16   ;;  %s1367_s28 = smov [#allocation2]  }
   0x6   :  { %39 = dma.hbm_to_vmem [thread:$0]  %s32_s20, 4096, %s34_s22, [#allocation6], %s1365_s26, %s1365_s26, %s1366_s27  }
   0x7   :  { %s20_s29 = sshll.u32 %s1367_s28, 4  ;;  %s1368_s30 = smov 64   ;;  %s21_s29 = int_to_ptr.vmem [resolvable:$true] %s20_s29 }
   0x8   :  { %s1369_s6 = smov 4   ;;  %s45_s8 = sshll.u32 %s1601_s2, 4  ;;  %s46_s8 = int_to_ptr.hbm [resolvable:$true] %s45_s8 }
   0x9   :  { %26 = dma.hbm_to_vmem [thread:$0]  %s19_s25, 128, %s21_s29, [#allocation3], %s1368_s30, %s1368_s30, %s1369_s6  }
   0xa   :  { %s1370_s9 = smov [#allocation7]   ;;  %s55_s12 = sshll.u32 %s1602_s3, 4  ;;  %s56_s12 = int_to_ptr.hbm [resolvable:$true] %s55_s12 }
   0xb   :  { %s47_s10 = sshll.u32 %s1370_s9, 4  ;;  %s1371_s13 = smov [#allocation8]   ;;  %s48_s10 = int_to_ptr.vmem [resolvable:$true] %s47_s10 }
   0xc   :  { %50 = dma.hbm_to_vmem [thread:$0]  %s46_s8, 64, %s48_s10, [#allocation6]  }
   0xd   :  { %s57_s14 = sshll.u32 %s1371_s13, 4  ;;  %s58_s14 = int_to_ptr.vmem [resolvable:$true] %s57_s14 }
   0xe   :  { %63 = dma.hbm_to_vmem [thread:$0]  %s56_s12, 4096, %s58_s14, [#allocation9], %s1368_s30, %s1368_s30, %s1369_s6  }
   0xf   :  { %1356 = dma.done.wait [#allocation3], 128  }
  0x10   :  { %1357 = vsyncadd [#allocation3], 4294967168 }
  0x11   :  { %1358 = dma.done.wait [#allocation6], 4160  }
  0x12   :  { %1359 = vsyncadd [#allocation6], 4294963136 }
  0x13   :  { %1360 = dma.done.wait [#allocation9], 4096  }
  0x14   :  { %1361 = vsyncadd [#allocation9], 4294963200  ;;  %v977_v0 = vld [vmem:[#allocation5 + $0xe0] sm:$0xf]  ;;  %v1158_v1 = vld [vmem:[#allocation5 + $0xec] sm:$0xf0] }
  0x15   :  { %v1156_v2 = vld [vmem:[#allocation5 + $0xe4] sm:$0xf]  ;;  %v978_v3 = vor.u32 %v1158_v1, %v977_v0  ;;  %v979_v4 = vld [vmem:[#allocation5 + $0xf0] sm:$0xf0]  ;;  %v985_v5 = vld [vmem:[#allocation5 + $0xe8] sm:$0xf] }
  0x16   :  { %v1159_v6 = vld [vmem:[#allocation5 + $0xf4] sm:$0xf0]  ;;  %v982_v7 = vor.u32 %v1156_v2, %v979_v4  ;;  %v1157_v9 = vld [vmem:[#allocation5 + $0xec] sm:$0xf]  ;;  %v987_v10 = vld [vmem:[#allocation5 + $0xf8] sm:$0xf0] }
  0x17   :  { %v986_v8 = vor.u32 %v1159_v6, %v985_v5  ;;  %v961_v11 = vld [vmem:[#allocation5 + $0xc0] sm:$0xf]  ;;  %292 = vmatpush.bf16.msra.mxu0 %v978_v3  ;;  %v990_v12 = vor.u32 %v1157_v9, %v987_v10  ;;  %v1154_v13 = vld [vmem:[#allocation5 + $0xcc] sm:$0xf0]  ;;  %v1152_v14 = vld [vmem:[#allocation5 + $0xc4] sm:$0xf] }
  0x18   :  { %v963_v15 = vld [vmem:[#allocation5 + $0xd0] sm:$0xf0]  ;;  %306 = vmatpush.bf16.msra.mxu1 %v982_v7  ;;  %v962_v16 = vor.u32 %v1154_v13, %v961_v11  ;;  %v969_v18 = vld [vmem:[#allocation5 + $0xc8] sm:$0xf]  ;;  %v1155_v19 = vld [vmem:[#allocation5 + $0xd4] sm:$0xf0] }
  0x19   :  { %320 = vmatpush.bf16.msra.mxu2 %v986_v8  ;;  %v966_v17 = vor.u32 %v1152_v14, %v963_v15  ;;  %v1153_v20 = vld [vmem:[#allocation5 + $0xcc] sm:$0xf]  ;;  %334 = vmatpush.bf16.msra.mxu3 %v990_v12  ;;  %v970_v21 = vor.u32 %v1155_v19, %v969_v18  ;;  %v971_v22 = vld [vmem:[#allocation5 + $0xd8] sm:$0xf0]  ;;  %v945_v23 = vld [vmem:[#allocation5 + $0xa0] sm:$0xf] }
  0x1a   :  { %v1150_v24 = vld [vmem:[#allocation5 + $0xac] sm:$0xf0]  ;;  %v974_v25 = vor.u32 %v1153_v20, %v971_v22  ;;  %v1148_v26 = vld [vmem:[#allocation5 + $0xa4] sm:$0xf]  ;;  %v947_v27 = vld [vmem:[#allocation5 + $0xb0] sm:$0xf0] }
  0x1b   :  { %v953_v28 = vld [vmem:[#allocation5 + $0xa8] sm:$0xf]  ;;  %293 = vmatpush.bf16.msra.mxu0 %v962_v16  ;;  %v946_v29 = vor.u32 %v1150_v24, %v945_v23  ;;  %v1151_v30 = vld [vmem:[#allocation5 + $0xb4] sm:$0xf0]  ;;  %v1149_v31 = vld [vmem:[#allocation5 + $0xac] sm:$0xf]  ;;  %v950_v33 = vor.u32 %v1148_v26, %v947_v27 }
  0x1c   :  { %v955_v32 = vld [vmem:[#allocation5 + $0xb8] sm:$0xf0]  ;;  %307 = vmatpush.bf16.msra.mxu1 %v966_v17  ;;  %v954_v34 = vor.u32 %v1151_v30, %v953_v28  ;;  %v929_v35 = vld [vmem:[#allocation5 + $0x80] sm:$0xf]  ;;  %v1146_v36 = vld [vmem:[#allocation5 + $0x8c] sm:$0xf0] }
  0x1d   :  { %321 = vmatpush.bf16.msra.mxu2 %v970_v21  ;;  %v1144_v37 = vld [vmem:[#allocation5 + $0x84] sm:$0xf]  ;;  %335 = vmatpush.bf16.msra.mxu3 %v974_v25  ;;  %v958_v38 = vor.u32 %v1149_v31, %v955_v32  ;;  %v931_v39 = vld [vmem:[#allocation5 + $0x90] sm:$0xf0]  ;;  %v937_v40 = vld [vmem:[#allocation5 + $0x88] sm:$0xf]  ;;  %v930_v44 = vor.u32 %v1146_v36, %v929_v35 }
  0x1e   :  { %v1147_v41 = vld [vmem:[#allocation5 + $0x94] sm:$0xf0]  ;;  %v1145_v42 = vld [vmem:[#allocation5 + $0x8c] sm:$0xf]  ;;  %v939_v43 = vld [vmem:[#allocation5 + $0x98] sm:$0xf0]  ;;  %v934_v45 = vor.u32 %v1144_v37, %v931_v39 }
  0x1f   :  { %294 = vmatpush.bf16.msra.mxu0 %v946_v29  ;;  %v938_v46 = vor.u32 %v1147_v41, %v937_v40  ;;  %v913_v47 = vld [vmem:[#allocation5 + $0x60] sm:$0xf]  ;;  %v1142_v48 = vld [vmem:[#allocation5 + $0x6c] sm:$0xf0]  ;;  %v1140_v49 = vld [vmem:[#allocation5 + $0x64] sm:$0xf]  ;;  %v942_v50 = vor.u32 %v1145_v42, %v939_v43 }
  0x20   :  { %308 = vmatpush.bf16.msra.mxu1 %v950_v33  ;;  %v915_v51 = vld [vmem:[#allocation5 + $0x70] sm:$0xf0]  ;;  %v921_v52 = vld [vmem:[#allocation5 + $0x68] sm:$0xf]  ;;  %v1143_v53 = vld [vmem:[#allocation5 + $0x74] sm:$0xf0]  ;;  %v914_v56 = vor.u32 %v1142_v48, %v913_v47 }
  0x21   :  { %322 = vmatpush.bf16.msra.mxu2 %v954_v34  ;;  %336 = vmatpush.bf16.msra.mxu3 %v958_v38  ;;  %v1141_v54 = vld [vmem:[#allocation5 + $0x6c] sm:$0xf]  ;;  %v923_v55 = vld [vmem:[#allocation5 + $0x78] sm:$0xf0]  ;;  %v918_v57 = vor.u32 %v1140_v49, %v915_v51  ;;  %v922_v58 = vor.u32 %v1143_v53, %v921_v52  ;;  %v897_v59 = vld [vmem:[#allocation5 + $0x40] sm:$0xf] }
  0x22   :  { %v1138_v60 = vld [vmem:[#allocation5 + $0x4c] sm:$0xf0]  ;;  %v1136_v61 = vld [vmem:[#allocation5 + $0x44] sm:$0xf]  ;;  %v926_v62 = vor.u32 %v1141_v54, %v923_v55  ;;  %v899_v63 = vld [vmem:[#allocation5 + $0x50] sm:$0xf0] }
  0x23   :  { %295 = vmatpush.bf16.msra.mxu0 %v930_v44  ;;  %v905_v0 = vld [vmem:[#allocation5 + $0x48] sm:$0xf]  ;;  %v1139_v1 = vld [vmem:[#allocation5 + $0x54] sm:$0xf0]  ;;  %v1137_v2 = vld [vmem:[#allocation5 + $0x4c] sm:$0xf]  ;;  %v898_v4 = vor.u32 %v1138_v60, %v897_v59  ;;  %v902_v5 = vor.u32 %v1136_v61, %v899_v63 }
  0x24   :  { %309 = vmatpush.bf16.msra.mxu1 %v934_v45  ;;  %v907_v3 = vld [vmem:[#allocation5 + $0x58] sm:$0xf0]  ;;  %v906_v6 = vor.u32 %v1139_v1, %v905_v0  ;;  %v881_v7 = vld [vmem:[#allocation5 + $0x20] sm:$0xf]  ;;  %v1134_v8 = vld [vmem:[#allocation5 + $0x2c] sm:$0xf0] }
  0x25   :  { %323 = vmatpush.bf16.msra.mxu2 %v938_v46  ;;  %337 = vmatpush.bf16.msra.mxu3 %v942_v50  ;;  %v1132_v9 = vld [vmem:[#allocation5 + $0x24] sm:$0xf]  ;;  %v910_v10 = vor.u32 %v1137_v2, %v907_v3  ;;  %v883_v11 = vld [vmem:[#allocation5 + $0x30] sm:$0xf0]  ;;  %v889_v12 = vld [vmem:[#allocation5 + $0x28] sm:$0xf]  ;;  %v882_v16 = vor.u32 %v1134_v8, %v881_v7 }
  0x26   :  { %v1135_v13 = vld [vmem:[#allocation5 + $0x34] sm:$0xf0]  ;;  %v1133_v14 = vld [vmem:[#allocation5 + $0x2c] sm:$0xf]  ;;  %v891_v15 = vld [vmem:[#allocation5 + $0x38] sm:$0xf0]  ;;  %v886_v17 = vor.u32 %v1132_v9, %v883_v11 }
  0x27   :  { %296 = vmatpush.bf16.msra.mxu0 %v914_v56  ;;  %v890_v18 = vor.u32 %v1135_v13, %v889_v12  ;;  %v865_v19 = vld [vmem:[#allocation5] sm:$0xf]  ;;  %v1130_v20 = vld [vmem:[#allocation5 + $0xc] sm:$0xf0]  ;;  %v1128_v21 = vld [vmem:[#allocation5 + $0x4] sm:$0xf]  ;;  %v894_v22 = vor.u32 %v1133_v14, %v891_v15 }
  0x28   :  { %310 = vmatpush.bf16.msra.mxu1 %v918_v57  ;;  %v867_v23 = vld [vmem:[#allocation5 + $0x10] sm:$0xf0]  ;;  %v873_v24 = vld [vmem:[#allocation5 + $0x8] sm:$0xf]  ;;  %v1131_v25 = vld [vmem:[#allocation5 + $0x14] sm:$0xf0]  ;;  %v866_v28 = vor.u32 %v1130_v20, %v865_v19 }
  0x29   :  { %324 = vmatpush.bf16.msra.mxu2 %v922_v58  ;;  %338 = vmatpush.bf16.msra.mxu3 %v926_v62  ;;  %v1129_v26 = vld [vmem:[#allocation5 + $0xc] sm:$0xf]  ;;  %v875_v27 = vld [vmem:[#allocation5 + $0x18] sm:$0xf0]  ;;  %v870_v29 = vor.u32 %v1128_v21, %v867_v23  ;;  %v874_v30 = vor.u32 %v1131_v25, %v873_v24  ;;  %v1417_v33 = vld [vmem:[#allocation7] sm:$0xf] }
  0x2a   :  { %v878_v31 = vor.u32 %v1129_v26, %v875_v27  ;;  %v1127_v32 = vld [vmem:[#allocation2] sm:$0xff]  ;;  %v118_v36 = vperm.slane %v1417_v33, 0  ;;  %v119_v37 = vperm.slane %v1417_v33, 1  ;;  %v120_v48 = vperm.slane %v1417_v33, 2  ;;  %v1165_v49 = vld [vmem:[#allocation8 + $0x28] sm:$0xff]  ;;  %v1164_v60 = vld [vmem:[#allocation8 + $0x20] sm:$0xff] }
  0x2b   :  { %297 = vmatpush.bf16.msra.mxu0 %v898_v4  ;;  %v1167_v34 = vld [vmem:[#allocation8 + $0x38] sm:$0xff]  ;;  %v1166_v39 = vld [vmem:[#allocation8 + $0x30] sm:$0xff]  ;;  %v1173_v50 = vld [vmem:[#allocation8 + $0x68] sm:$0xff]  ;;  %v121_v52 = vperm.slane %v1417_v33, 3  ;;  %s1372_s15 = smov [#allocation10]   ;;  %s1373_s19 = smov 128  }
  0x2c   :  { %311 = vmatpush.bf16.msra.mxu1 %v902_v5  ;;  %v1175_v35 = vld [vmem:[#allocation8 + $0x78] sm:$0xff]  ;;  %v1174_v40 = vld [vmem:[#allocation8 + $0x70] sm:$0xff]  ;;  %v1172_v61 = vld [vmem:[#allocation8 + $0x60] sm:$0xff]  ;;  %s842_s16 = sshll.u32 %s1372_s15, 4  ;;  %s1374_s20 = smov 8   ;;  %s843_s16 = int_to_ptr.vmem [resolvable:$true] %s842_s16 }
  0x2d   :  { %325 = vmatpush.bf16.msra.mxu2 %v906_v6  ;;  %339 = vmatpush.bf16.msra.mxu3 %v910_v10  ;;  %v1183_v44 = vld [vmem:[#allocation8 + $0xb8] sm:$0xff]  ;;  %v1182_v54 = vld [vmem:[#allocation8 + $0xb0] sm:$0xff]  ;;  %v1181_v3 = vld [vmem:[#allocation8 + $0xa8] sm:$0xff] }
  0x2e   :  { %v1191_v45 = vld [vmem:[#allocation8 + $0xf8] sm:$0xff]  ;;  %v1190_v55 = vld [vmem:[#allocation8 + $0xf0] sm:$0xff]  ;;  %v1189_v4 = vld [vmem:[#allocation8 + $0xe8] sm:$0xff] }
  0x2f   :  { %298 = vmatpush.bf16.msra.mxu0 %v882_v16  ;;  %v1163_v9 = vld [vmem:[#allocation8 + $0x18] sm:$0xff]  ;;  %v1180_v16 = vld [vmem:[#allocation8 + $0xa0] sm:$0xff]  ;;  %v1162_v21 = vld [vmem:[#allocation8 + $0x10] sm:$0xff] }
  0x30   :  { %312 = vmatpush.bf16.msra.mxu1 %v886_v17  ;;  %v1171_v10 = vld [vmem:[#allocation8 + $0x58] sm:$0xff]  ;;  %v1188_v17 = vld [vmem:[#allocation8 + $0xe0] sm:$0xff] }
  0x31   :  { %326 = vmatpush.bf16.msra.mxu2 %v890_v18  ;;  %340 = vmatpush.bf16.msra.mxu3 %v894_v22  ;;  %v1170_v22 = vld [vmem:[#allocation8 + $0x50] sm:$0xff]  ;;  %v1179_v24 = vld [vmem:[#allocation8 + $0x98] sm:$0xff] }
  0x32   :  { %v1187_v25 = vld [vmem:[#allocation8 + $0xd8] sm:$0xff] }
  0x33   :  { %299 = vmatpush.bf16.msra.mxu0 %v866_v28 }
  0x34   :  { %313 = vmatpush.bf16.msra.mxu1 %v870_v29  ;;  %v1161_v29 = vld [vmem:[#allocation8 + $0x8] sm:$0xff] }
  0x35   :  { %327 = vmatpush.bf16.msra.mxu2 %v874_v30  ;;  %341 = vmatpush.bf16.msra.mxu3 %v878_v31  ;;  %v1169_v30 = vld [vmem:[#allocation8 + $0x48] sm:$0xff] }
  0x36   :  { %300 = vmatmul.bf16.vlgmr.msra.gmra.mxu0 %v1127_v32 }
  0x37   :  { %314 = vmatmul.bf16.vlgmr.msra.gmra.mxu1 %v1127_v32  ;;  %780 = vmatpush.bf16.msrb.mxu0 %v1167_v34 }
  0x38   :  { %328 = vmatmul.bf16.vlgmr.msra.gmra.mxu2 %v1127_v32  ;;  %342 = vmatmul.bf16.vlgmr.msra.gmra.mxu3 %v1127_v32 }
  0x39   :  { %794 = vmatpush.bf16.msrb.mxu1 %v1175_v35  ;;  %808 = vmatpush.bf16.msrb.mxu2 %v1183_v44  ;;  %v1178_v35 = vld [vmem:[#allocation8 + $0x90] sm:$0xff] }
  0x3a   :  { %822 = vmatpush.bf16.msrb.mxu3 %v1191_v45 }
  0x3b   :  { %781 = vmatpush.bf16.msrb.mxu0 %v1166_v39 }
  0x3d   :  { %795 = vmatpush.bf16.msrb.mxu1 %v1174_v40  ;;  %809 = vmatpush.bf16.msrb.mxu2 %v1182_v54 }
  0x3e   :  { %823 = vmatpush.bf16.msrb.mxu3 %v1190_v55 }
  0x3f   :  { %782 = vmatpush.bf16.msrb.mxu0 %v1165_v49 }
  0x41   :  { %796 = vmatpush.bf16.msrb.mxu1 %v1173_v50  ;;  %810 = vmatpush.bf16.msrb.mxu2 %v1181_v3 }
  0x42   :  { %824 = vmatpush.bf16.msrb.mxu3 %v1189_v4 }
  0x43   :  { %783 = vmatpush.bf16.msrb.mxu0 %v1164_v60 }
  0x45   :  { %797 = vmatpush.bf16.msrb.mxu1 %v1172_v61  ;;  %811 = vmatpush.bf16.msrb.mxu2 %v1180_v16  ;;  %v1176_v61 = vld [vmem:[#allocation8 + $0x80] sm:$0xff] }
  0x46   :  { %825 = vmatpush.bf16.msrb.mxu3 %v1188_v17 }
  0x47   :  { %784 = vmatpush.bf16.msrb.mxu0 %v1163_v9 }
  0x49   :  { %798 = vmatpush.bf16.msrb.mxu1 %v1171_v10  ;;  %812 = vmatpush.bf16.msrb.mxu2 %v1179_v24 }
  0x4a   :  { %826 = vmatpush.bf16.msrb.mxu3 %v1187_v25 }
  0x4b   :  { %785 = vmatpush.bf16.msrb.mxu0 %v1162_v21 }
  0x4d   :  { %799 = vmatpush.bf16.msrb.mxu1 %v1170_v22  ;;  %813 = vmatpush.bf16.msrb.mxu2 %v1178_v35 }
  0x4f   :  { %786 = vmatpush.bf16.msrb.mxu0 %v1161_v29 }
  0x51   :  { %800 = vmatpush.bf16.msrb.mxu1 %v1169_v30 }
  0xb3   :  { %v301_v38 = vpop.f32.mrf.mxu0 }
  0xb4   :  { %v1421_v41 = vadd.f32 %v301_v38, %v118_v36  ;;  %v315_v42 = vpop.f32.mrf.mxu1 }
  0xb5   :  { %v1423_v43 = vadd.f32 %v315_v42, %v119_v37 }
  0xb6   :  { %v991_v46 = vmul.f32 -1.702, %v1421_v41 }
  0xb7   :  { %v992_v47 = vmul.f32 -1.702, %v1423_v43 }
  0xb8   :  { %v364_v51 = vmul.f32 1.442695, %v991_v46  ;;  %v1160_v46 = vld [vmem:[#allocation8] sm:$0xff] }
  0xb9   :  { %v366_v53 = vmul.f32 1.442695, %v992_v47  ;;  %v1168_v47 = vld [vmem:[#allocation8 + $0x40] sm:$0xff]  ;;  %787 = vmatpush.bf16.msrb.mxu0 %v1160_v46 }
  0xba   :  { %1204 = vpow2.f32 %v364_v51  ;;  %801 = vmatpush.bf16.msrb.mxu1 %v1168_v47  ;;  %v1177_v51 = vld [vmem:[#allocation8 + $0x88] sm:$0xff] }
  0xbb   :  { %v329_v56 = vpop.f32.mrf.mxu2  ;;  %1206 = vpow2.f32 %v366_v53  ;;  %v343_v58 = vpop.f32.mrf.mxu3  ;;  %v1185_v53 = vld [vmem:[#allocation8 + $0xc8] sm:$0xff]  ;;  %814 = vmatpush.bf16.msrb.mxu2 %v1177_v51 }
  0xbc   :  { %v1429_v57 = vadd.f32 %v329_v56, %v120_v48  ;;  %v303_v59 = vpop.f32.mrf.mxu0  ;;  %v1433_v62 = vadd.f32 %v343_v58, %v121_v52  ;;  %v317_v0 = vpop.f32.mrf.mxu1 }
  0xbd   :  { %v1435_v63 = vadd.f32 %v303_v59, %v118_v36  ;;  %v1438_v2 = vadd.f32 %v317_v0, %v119_v37  ;;  %v1186_v36 = vld [vmem:[#allocation8 + $0xd0] sm:$0xff]  ;;  %v1184_v0 = vld [vmem:[#allocation8 + $0xc0] sm:$0xff] }
  0xbe   :  { %v993_v1 = vmul.f32 -1.702, %v1429_v57  ;;  %v994_v5 = vmul.f32 -1.702, %v1433_v62  ;;  %827 = vmatpush.bf16.msrb.mxu3 %v1186_v36 }
  0xbf   :  { %v995_v6 = vmul.f32 -1.702, %v1435_v63  ;;  %v996_v8 = vmul.f32 -1.702, %v1438_v2  ;;  %815 = vmatpush.bf16.msrb.mxu2 %v1176_v61 }
  0xc0   :  { %v368_v7 = vmul.f32 1.442695, %v993_v1  ;;  %v1205_v11 = vpop.eup %1204  ;;  %v370_v12 = vmul.f32 1.442695, %v994_v5 }
  0xc1   :  { %v1207_v13 = vpop.eup %1206  ;;  %v1443_v14 = vadd.f32 1.0, %v1205_v11  ;;  %v372_v15 = vmul.f32 1.442695, %v995_v6  ;;  %v374_v19 = vmul.f32 1.442695, %v996_v8 }
  0xc2   :  { %1208 = vpow2.f32 %v368_v7  ;;  %v1445_v18 = vadd.f32 1.0, %v1207_v13  ;;  %828 = vmatpush.bf16.msrb.mxu3 %v1185_v53 }
  0xc3   :  { %1210 = vpow2.f32 %v370_v12  ;;  %v331_v20 = vpop.f32.mrf.mxu2  ;;  %v345_v28 = vpop.f32.mrf.mxu3  ;;  %v397_v58 = vand.u32 2147483647, %v1443_v14  ;;  %v399_v59 = vand.u32 2147483648, %v1443_v14  ;;  %vm393_vm0 = vweird.f32 %v1443_v14 }
  0xc4   :  { %1212 = vrcp.f32 %v1443_v14  ;;  %v1449_v23 = vadd.f32 %v331_v20, %v120_v48  ;;  %v1465_v40 = vadd.f32 %v345_v28, %v121_v52  ;;  %v412_v4 = vand.u32 2147483647, %v1445_v18 }
  0xc5   :  { %1214 = vrcp.f32 %v1445_v18  ;;  %v414_v5 = vand.u32 2147483648, %v1445_v18  ;;  %vm408_vm2 = vweird.f32 %v1445_v18  ;;  %vm1493_vm3 = vcmp.eq.f32.partialorder %v397_v58, 8.507059e+37 }
  0xc6   :  { %1216 = vpow2.f32 %v372_v15  ;;  %v997_v27 = vmul.f32 -1.702, %v1449_v23  ;;  %v998_v54 = vmul.f32 -1.702, %v1465_v40  ;;  %829 = vmatpush.bf16.msrb.mxu3 %v1184_v0  ;;  %v400_v10 = vor.u32 1.1754944e-38, %v399_v59 }
  0xc7   :  { %1218 = vpow2.f32 %v374_v19  ;;  %vm1506_vm6 = vcmp.eq.f32.partialorder %v412_v4, 8.507059e+37  ;;  %v415_v19 = vor.u32 1.1754944e-38, %v414_v5 }
  0xc8   :  { %v1209_v26 = vpop.eup %1208  ;;  %v376_v45 = vmul.f32 1.442695, %v997_v27  ;;  %v378_v3 = vmul.f32 1.442695, %v998_v54 }
  0xc9   :  { %v1211_v31 = vpop.eup %1210  ;;  %v1452_v32 = vadd.f32 1.0, %v1209_v26 }
  0xca   :  { %v1454_v34 = vpop.eup %1212  ;;  %v1461_v39 = vadd.f32 1.0, %v1211_v31 }
  0xcb   :  { %v1456_v37 = vpop.eup %1214  ;;  %v389_v38 = vmul.f32 %v1454_v34, %v1443_v14  ;;  %1220 = vrcp.f32 %v1452_v32  ;;  %vm394_vm1 = vweird.f32 %v1454_v34  ;;  %v427_v20 = vand.u32 2147483647, %v1452_v32 }
  0xcc   :  { %v1217_v42 = vpop.eup %1216  ;;  %v404_v44 = vmul.f32 %v1456_v37, %v1445_v18  ;;  %1222 = vrcp.f32 %v1461_v39  ;;  %vm409_vm4 = vweird.f32 %v1456_v37  ;;  %vm1502_vm5 = vmor %vm393_vm0, %vm394_vm1  ;;  %vm423_vm8 = vweird.f32 %v1452_v32 }
  0xcd   :  { %v1219_v48 = vpop.eup %1218  ;;  %v390_v49 = vsub.f32 1.0, %v389_v38  ;;  %v1470_v33 = vadd.f32 1.0, %v1217_v42  ;;  %1224 = vpow2.f32 %v376_v45  ;;  %vm1517_vm7 = vmor %vm408_vm2, %vm409_vm4  ;;  %v429_v26 = vand.u32 2147483648, %v1452_v32 }
  0xce   :  { %v405_v50 = vsub.f32 1.0, %v404_v44  ;;  %v1472_v52 = vadd.f32 1.0, %v1219_v48  ;;  %vm428_vm4 = vcmp.eq.f32.partialorder %v427_v20, 8.507059e+37  ;;  %v444_v17 = vand.u32 2147483648, %v1461_v39 }
  0xcf   :  { %v391_v56 = vmul.f32 %v1454_v34, %v390_v49  ;;  %1226 = vrcp.f32 %v1470_v33  ;;  %v457_v15 = vand.u32 2147483647, %v1470_v33  ;;  %vm453_vm9 = vweird.f32 %v1470_v33 }
  0xd0   :  { %v406_v60 = vmul.f32 %v1456_v37, %v405_v50  ;;  %1228 = vrcp.f32 %v1472_v52  ;;  %v472_v45 = vand.u32 2147483647, %v1472_v52  ;;  %v474_v46 = vand.u32 2147483648, %v1472_v52 }
  0xd1   :  { %v1475_v55 = vpop.eup %1220  ;;  %v392_v7 = vadd.f32 %v1454_v34, %v391_v56  ;;  %1230 = vpow2.f32 %v378_v3  ;;  %vm1533_vm11 = vcmp.eq.f32.partialorder %v457_v15, 8.507059e+37  ;;  %vm468_vm15 = vweird.f32 %v1472_v52 }
  0xd2   :  { %v419_v1 = vmul.f32 %v1475_v55, %v1452_v32  ;;  %v1487_v6 = vpop.eup %1222  ;;  %v407_v11 = vadd.f32 %v1456_v37, %v406_v60  ;;  %vm424_vm10 = vweird.f32 %v1475_v55  ;;  %vm473_vm2 = vcmp.eq.f32.partialorder %v472_v45, 8.507059e+37 }
  0xd3   :  { %v1225_v8 = vpop.eup %1224  ;;  %v396_v24 = vsel %vm1502_vm5, %v1454_v34, %v392_v7  ;;  %v434_v27 = vmul.f32 %v1487_v6, %v1461_v39  ;;  %v459_v34 = vand.u32 2147483648, %v1470_v33  ;;  %vm1561_vm1 = vmor %vm423_vm8, %vm424_vm10 }
  0xd4   :  { %v420_v13 = vsub.f32 1.0, %v419_v1  ;;  %v1500_v16 = vadd.f32 1.0, %v1225_v8  ;;  %v411_v28 = vsel %vm1517_vm7, %v1456_v37, %v407_v11  ;;  %v401_v35 = vsel %vm1493_vm3, %v400_v10, %v396_v24 }
  0xd5   :  { %v1227_v12 = vpop.eup %1226  ;;  %v416_v42 = vsel %vm1506_vm6, %v415_v19, %v411_v28  ;;  %v435_v44 = vsub.f32 1.0, %v434_v27  ;;  %v508_v51 = vmul.f32 %v401_v35, %v1421_v41  ;;  %v460_v54 = vor.u32 1.1754944e-38, %v459_v34 }
  0xd6   :  { %v449_v21 = vmul.f32 %v1227_v12, %v1470_v33  ;;  %v1229_v22 = vpop.eup %1228  ;;  %1232 = vrcp.f32 %v1500_v16  ;;  %v421_v30 = vmul.f32 %v1475_v55, %v420_v13  ;;  %vm454_vm12 = vweird.f32 %v1227_v12 }
  0xd7   :  { %v464_v18 = vmul.f32 %v1229_v22, %v1472_v52  ;;  %v1231_v38 = vpop.eup %1230  ;;  %vm469_vm13 = vweird.f32 %v1229_v22  ;;  %vm455_vm14 = vmor %vm453_vm9, %vm454_vm12  ;;  %v509_v56 = vmul.f32 %v416_v42, %v1423_v43  ;;  %v436_v61 = vmul.f32 %v1487_v6, %v435_v44 }
  0xd8   :  { %v450_v29 = vsub.f32 1.0, %v449_v21  ;;  %v1544_v49 = vadd.f32 1.0, %v1231_v38  ;;  %v422_v53 = vadd.f32 %v1475_v55, %v421_v30  ;;  %vm470_vm0 = vmor %vm468_vm15, %vm469_vm13  ;;  %v475_v41 = vor.u32 1.1754944e-38, %v474_v46 }
  0xd9   :  { %v465_v37 = vsub.f32 1.0, %v464_v18  ;;  %v487_v5 = vand.u32 2147483647, %v1500_v16  ;;  %v489_v7 = vand.u32 2147483648, %v1500_v16  ;;  %v430_v10 = vor.u32 1.1754944e-38, %v429_v26 }
  0xda   :  { %v451_v36 = vmul.f32 %v1227_v12, %v450_v29  ;;  %1234 = vrcp.f32 %v1544_v49  ;;  %v426_v3 = vsel %vm1561_vm1, %v1475_v55, %v422_v53  ;;  %vm483_vm5 = vweird.f32 %v1500_v16 }
  0xdb   :  { %v466_v48 = vmul.f32 %v1229_v22, %v465_v37  ;;  %v431_v13 = vsel %vm428_vm4, %v430_v10, %v426_v3  ;;  %v437_v55 = vadd.f32 %v1487_v6, %v436_v61  ;;  %vm439_vm6 = vweird.f32 %v1487_v6  ;;  %v1203_v37 = vld [vmem:[%s1603_s4] ss:$0 sm:$0xff]  ;;  %s844_s4 = sshll.u32 %s1604_s5, 4  ;;  %s845_s4 = int_to_ptr.hbm [resolvable:$true] %s844_s4 }
  0xdc   :  { %v452_v47 = vadd.f32 %v1227_v12, %v451_v36  ;;  %v1233_v50 = vpop.eup %1232  ;;  %v490_v15 = vor.u32 1.1754944e-38, %v489_v7  ;;  %vm488_vm8 = vcmp.eq.f32.partialorder %v487_v5, 8.507059e+37  ;;  %vm438_vm9 = vweird.f32 %v1461_v39 }
  0xdd   :  { %v467_v59 = vadd.f32 %v1229_v22, %v466_v48  ;;  %v479_v60 = vmul.f32 %v1233_v50, %v1500_v16  ;;  %vm484_vm3 = vweird.f32 %v1233_v50  ;;  %v510_v19 = vmul.f32 %v431_v13, %v1429_v57  ;;  %vm1579_vm10 = vmor %vm438_vm9, %vm439_vm6 }
  0xde   :  { %v456_v58 = vsel %vm455_vm14, %v1227_v12, %v452_v47  ;;  %vm485_vm7 = vmor %vm483_vm5, %vm484_vm3  ;;  %v442_v21 = vand.u32 2147483647, %v1461_v39  ;;  %v441_v25 = vsel %vm1579_vm10, %v1487_v6, %v437_v55  ;;  %v504_v26 = vand.u32 2147483648, %v1544_v49 }
  0xdf   :  { %v461_v0 = vsel %vm1533_vm11, %v460_v54, %v456_v58  ;;  %v471_v52 = vsel %vm470_vm0, %v1229_v22, %v467_v59  ;;  %v480_v1 = vsub.f32 1.0, %v479_v60  ;;  %v502_v28 = vand.u32 2147483647, %v1544_v49 }
  0xe0   :  { %v512_v43 = vmul.f32 %v461_v0, %v1435_v63  ;;  %v476_v4 = vsel %vm473_vm2, %v475_v41, %v471_v52  ;;  %v1235_v12 = vpop.eup %1234  ;;  %v445_v29 = vor.u32 1.1754944e-38, %v444_v17  ;;  %vm443_vm12 = vcmp.eq.f32.partialorder %v442_v21, 8.507059e+37 }
  0xe1   :  { %v513_v32 = vmul.f32 %v476_v4, %v1438_v2  ;;  %v481_v8 = vmul.f32 %v1233_v50, %v480_v1  ;;  %v494_v2 = vmul.f32 %v1235_v12, %v1544_v49  ;;  %vm499_vm11 = vweird.f32 %v1235_v12 }
  0xe2   :  { %v516_v9 = vpack.c.bf16 %v512_v43, %v508_v51  ;;  %vm498_vm13 = vweird.f32 %v1544_v49  ;;  %v446_v39 = vsel %vm443_vm12, %v445_v29, %v441_v25  ;;  %vm503_vm15 = vcmp.eq.f32.partialorder %v502_v28, 8.507059e+37 }
  0xe3   :  { %v482_v63 = vadd.f32 %v1233_v50, %v481_v8  ;;  %v517_v11 = vpack.c.bf16 %v513_v32, %v509_v56  ;;  %v495_v24 = vsub.f32 1.0, %v494_v2  ;;  %vm500_vm14 = vmor %vm498_vm13, %vm499_vm11  ;;  %v511_v6 = vmul.f32 %v446_v39, %v1433_v62 }
  0xe4   :  { %788 = vmatmul.bf16.vlgmr.msrb.gmra.mxu0 %v516_v9 }
  0xe5   :  { %v486_v14 = vsel %vm485_vm7, %v1233_v50, %v482_v63  ;;  %802 = vmatmul.bf16.vlgmr.msrb.gmra.mxu1 %v517_v11  ;;  %v496_v27 = vmul.f32 %v1235_v12, %v495_v24 }
  0xe6   :  { %v491_v16 = vsel %vm488_vm8, %v490_v15, %v486_v14 }
  0xe7   :  { %v514_v22 = vmul.f32 %v491_v16, %v1449_v23  ;;  %v497_v18 = vadd.f32 %v1235_v12, %v496_v27  ;;  %v505_v23 = vor.u32 1.1754944e-38, %v504_v26 }
  0xe9   :  { %v518_v57 = vpack.c.bf16 %v514_v22, %v510_v19  ;;  %v501_v30 = vsel %vm500_vm14, %v1235_v12, %v497_v18 }
  0xea   :  { %v506_v31 = vsel %vm503_vm15, %v505_v23, %v501_v30 }
  0xeb   :  { %816 = vmatmul.bf16.vlgmr.msrb.gmra.mxu2 %v518_v57  ;;  %v515_v34 = vmul.f32 %v506_v31, %v1465_v40 }
  0xed   :  { %v519_v35 = vpack.c.bf16 %v515_v34, %v511_v6 }
  0xef   :  { %830 = vmatmul.bf16.vlgmr.msrb.gmra.mxu3 %v519_v35 }
 0x161   :  { %v789_v36 = vpop.f32.mrf.mxu0 }
 0x162   :  { %v790_v38 = vadd.f32 %v1203_v37, %v789_v36  ;;  %v803_v42 = vpop.f32.mrf.mxu1 }
 0x164   :  { %v804_v45 = vadd.f32 %v803_v42, %v790_v38 }
 0x169   :  { %v791_v46 = vpop.f32.mrf.mxu0 }
 0x16a   :  { %v792_v48 = vadd.f32 %v1203_v37, %v791_v46  ;;  %v805_v51 = vpop.f32.mrf.mxu1 }
 0x16c   :  { %v806_v53 = vadd.f32 %v805_v51, %v792_v48 }
 0x16e   :  { %v817_v44 = vpop.f32.mrf.mxu2 }
 0x16f   :  { %v818_v47 = vadd.f32 %v817_v44, %v804_v45 }
 0x172   :  { %v831_v49 = vpop.f32.mrf.mxu3 }
 0x173   :  { %v832_v50 = vadd.f32 %v831_v49, %v818_v47 }
 0x175   :  { %836 = vst [vmem:[#allocation10] sm:$0xff] %v832_v50 }
 0x176   :  { %v819_v62 = vpop.f32.mrf.mxu2 }
 0x177   :  { %v820_v40 = vadd.f32 %v819_v62, %v806_v53 }
 0x17a   :  { %v833_v54 = vpop.f32.mrf.mxu3 }
 0x17b   :  { %v834_v56 = vadd.f32 %v833_v54, %v820_v40 }
 0x17d   :  { %837 = vst [vmem:[#allocation10 + $0x8] sm:$0xff] %v834_v56 }
 0x17e   :  { %850 = dma.vmem_to_hbm [thread:$0]  %s843_s16, 256, %s845_s4, [#allocation4], %s1373_s19, %s1373_s19, %s1374_s20  }
 0x17f   :  { %1362 = dma.done.wait [#allocation4], 256  }
 0x180   :  { %1363 = vsyncadd [#allocation4], 4294967040 }
 0x181   :  { %855 = vsyncpa [#allocation3], 1 }
 0x182   :  { %856 = vsyncpa [#allocation6], 1 }
 0x183   :  { %857 = vsyncpa [#allocation9], 1 }
 0x184   :  { %858 = vsyncpa [#allocation4], 1 }

</bundles_post_ra>
